<compile_context>
chip_gen: v6e
topology: v6e:2x2x1
jax: 0.10.0
libtpu: 0.0.40
codegen_flags: <defaults>
</compile_context>

<pallas_src>
import functools
import math

import jax
import jax.numpy as jnp
from jax import lax
from jax.experimental import pallas as pl
from jax.experimental.pallas import tpu as pltpu


def _mha_kernel(head_num, key_dim, scale, need_weights, compute_dtype,
                x_ref, bias_ref, wqkv_ref, bqkv_ref, wfc_ref, bfc_ref,
                *out_refs):
    """Grid = (batch, head).  One head of one batch element per step.

    x_ref    : (1, L, H)      activations, compute_dtype (reused across heads)
    bias_ref : (1, Lb, L)     additive mask bias (0 / -1e30), compute_dtype
    wqkv_ref : (nh, H, 3*kd)  head-major fused [Wq|Wk|Wv] blocks, compute_dtype
    bqkv_ref : (nh, 1, 3*kd)  fused q/k/v biases, f32
    wfc_ref  : (nh, kd, H)    per-head row-blocks of Wfc^T, compute_dtype
    bfc_ref  : (1, H)         fc bias, f32
    out_refs : out (1, L, H) f32, accumulated across the head axis
               [, attn (1, 1, L, L) f32 when need_weights]
    """
    if need_weights:
        out_ref, attn_ref = out_refs
    else:
        (out_ref,) = out_refs
        attn_ref = None

    h = pl.program_id(1)
    L = x_ref.shape[1]
    kd = key_dim

    x = x_ref[0]                                   # (L, H) compute_dtype
    w_h = wqkv_ref[h]                              # (H, 3*kd) dynamic lead idx

    # Fused q/k/v projection for this head: one MXU matmul, f32 accumulation.
    qkv = jnp.dot(x, w_h, preferred_element_type=jnp.float32) + bqkv_ref[h]

    # Static column slices (lane-aligned when kd % 128 == 0).
    q_h = (qkv[:, 0 * kd:1 * kd] * scale).astype(compute_dtype)
    k_h = qkv[:, 1 * kd:2 * kd].astype(compute_dtype)
    v_h = qkv[:, 2 * kd:3 * kd].astype(compute_dtype)

    # Scores: contract over key_dim directly (no explicit transpose).
    s = lax.dot_general(q_h, k_h,
                        dimension_numbers=(((1,), (1,)), ((), ())),
                        preferred_element_type=jnp.float32)      # (L, L) f32
    s = s + bias_ref[0]                       # bf16 bias promotes to f32

    m = jnp.max(s, axis=-1, keepdims=True)
    p = jnp.exp(s - m)
    inv = pl.reciprocal(jnp.sum(p, axis=-1, keepdims=True), approx=True)
    p = p * inv                                                   # softmax

    if need_weights:
        attn_ref[0, 0, :, :] = p

    ctx = jnp.dot(p.astype(compute_dtype), v_h,
                  preferred_element_type=jnp.float32)             # (L, kd)
    # Per-head slice of the fc projection, accumulated into the resident
    # f32 output block (out = sum_h ctx_h @ Wfc^T[h*kd:(h+1)*kd, :] + bfc).
    contrib = jnp.dot(ctx.astype(compute_dtype), wfc_ref[h],
                      preferred_element_type=jnp.float32)         # (L, H)

    @pl.when(h == 0)
    def _():
        out_ref[0] = contrib + bfc_ref[0]

    @pl.when(h > 0)
    def _():
        out_ref[0] += contrib


def _const_block_spec(shape):
    """BlockSpec for grid-invariant operands (weights / biases).

    Constant index map -> fetched once and kept resident; single-buffered to
    avoid paying 2x VMEM for pointless double buffering.  Falls back to a
    plain BlockSpec on jax versions without pipeline_mode support.
    """
    index_map = lambda b, h: (0,) * len(shape)
    try:
        return pl.BlockSpec(shape, index_map,
                            pipeline_mode=pl.Buffered(buffer_count=1))
    except Exception:  # pragma: no cover - older jax without pl.Buffered
        return pl.BlockSpec(shape, index_map)


def multihead_attention(x, padding_mask, params, head_num, attn_mask=None,
                        need_weights=True, compute_dtype=jnp.bfloat16):
    """Self-attention forward matching MultiHeadAttention.forward (eval mode).

    x            : (B, L, H) float32
    padding_mask : (B, L) bool, True = padded key position
    attn_mask    : optional (B, L, L) bool, True = masked
    Returns (out, attn) with attn shaped (B*head_num, L, L) like PyTorch,
    or just `out` if need_weights=False.
    """
    B, L, H = x.shape
    kd = H // head_num
    assert kd * head_num == H
    scale = 1.0 / math.sqrt(kd)                 # Python float (static)
    cd = jnp.dtype(compute_dtype)

    # Fold padding_mask (and attn_mask, if given) into ONE additive bias.
    # A large finite negative is used instead of -inf: exp underflows to 0 for
    # any row with at least one visible key; fully-masked rows give a uniform
    # distribution instead of NaN.  Streamed in compute dtype to halve the
    # O(L^2) mask DMA when attn_mask is present.
    neg = jnp.float32(-1e30)
    pad_bias = jnp.where(padding_mask, neg, jnp.float32(0.0))        # (B, L)
    if attn_mask is None:
        bias = pad_bias[:, None, :]                                  # (B,1,L)
    else:
        bias = (jnp.where(attn_mask, neg, jnp.float32(0.0))
                + pad_bias[:, None, :])                              # (B,L,L)
    bias = bias.astype(cd)
    Lb = bias.shape[1]

    x_c = x.astype(cd)

    # Head-major fused projection weights: for head h the block is
    # [Wq_h | Wk_h | Wv_h] of shape (H, 3*kd), stacked on a leading head axis
    # so the kernel indexes wqkv[h] (dynamic leading-dim index, no lane-dim
    # dynamic slicing, no per-step HBM weight re-streaming).
    def _head_major(w):                     # (out,in) torch layout -> (nh,H,kd)
        wt = w.T.astype(cd)                                 # (in=H, out=H)
        return jnp.transpose(wt.reshape(H, head_num, kd), (1, 0, 2))

    wqkv = jnp.concatenate(
        [_head_major(params["wq"]), _head_major(params["wk"]),
         _head_major(params["wv"])], axis=-1)               # (nh, H, 3*kd)
    bqkv = jnp.concatenate(
        [params["bq"].reshape(head_num, 1, kd),
         params["bk"].reshape(head_num, 1, kd),
         params["bv"].reshape(head_num, 1, kd)], axis=-1).astype(jnp.float32)
    wfc = params["wfc"].T.astype(cd).reshape(head_num, kd, H)   # (nh, kd, H)
    bfc = params["bfc"].reshape(1, H).astype(jnp.float32)

    kernel = functools.partial(_mha_kernel, head_num, kd, scale,
                               need_weights, cd)

    out_shapes = [jax.ShapeDtypeStruct((B, L, H), jnp.float32)]
    out_specs = [pl.BlockSpec((1, L, H), lambda b, h: (b, 0, 0))]
    if need_weights:
        out_shapes.append(
            jax.ShapeDtypeStruct((B, head_num, L, L), jnp.float32))
        out_specs.append(pl.BlockSpec((1, 1, L, L),
                                      lambda b, h: (b, h, 0, 0)))

    # Explicit, generation-aware VMEM budget derived from the block footprint.
    cds = cd.itemsize
    block_bytes = (
        2 * L * H * cds                      # x (double-buffered, reused over h)
        + 2 * Lb * L * cds                   # mask bias
        + 3 * H * H * cds                    # wqkv (resident, single-buffered)
        + head_num * 3 * kd * 4              # bqkv
        + H * H * cds                        # wfc (resident)
        + H * 4                              # bfc
        + 2 * L * H * 4                      # out block (double-buffered)
        + (2 * L * L * 4 if need_weights else 0)   # attn block
        + 2 * L * 3 * kd * 4                 # qkv f32 + casts
        + 3 * L * L * 4                      # scores / softmax temporaries
        + 2 * L * H * 4)                     # fc contribution temporaries
    try:
        info = pltpu.get_tpu_info()
        phys_vmem = int(getattr(info, "vmem_capacity_bytes", 0)) or 128 * 2 ** 20
    except Exception:  # pragma: no cover - query unavailable
        phys_vmem = 128 * 2 ** 20
    vmem_cap = (phys_vmem * 7) // 8          # ~12% headroom below physical
    vmem_limit = int(min(max(2 * block_bytes, 32 * 2 ** 20), vmem_cap))

    call_kwargs = {}
    if hasattr(pl, "CostEstimate"):
        flops = 2 * B * (4 * L * H * H + 2 * head_num * L * L * kd)
        bytes_accessed = (B * L * H * cds + B * Lb * L * cds
                          + 4 * H * H * cds + 4 * H * 4
                          + B * L * H * 4
                          + (B * head_num * L * L * 4 if need_weights else 0))
        call_kwargs["cost_estimate"] = pl.CostEstimate(
            flops=flops,
            transcendentals=B * head_num * L * L,
            bytes_accessed=bytes_accessed)

    results = pl.pallas_call(
        kernel,
        out_shape=tuple(out_shapes),
        grid=(B, head_num),
        in_specs=[
            pl.BlockSpec((1, L, H), lambda b, h: (b, 0, 0)),     # x
            pl.BlockSpec((1, Lb, L), lambda b, h: (b, 0, 0)),    # mask bias
            _const_block_spec((head_num, H, 3 * kd)),            # wqkv
            _const_block_spec((head_num, 1, 3 * kd)),            # bqkv
            _const_block_spec((head_num, kd, H)),                # wfc
            _const_block_spec((1, H)),                           # bfc
        ],
        out_specs=tuple(out_specs),
        compiler_params=pltpu.CompilerParams(
            dimension_semantics=("parallel", "arbitrary"),
            vmem_limit_bytes=vmem_limit),
        **call_kwargs,
    )(x_c, bias, wqkv, bqkv, wfc, bfc)

    if need_weights:
        out, attn = results
        # PyTorch returns attn weights as (B*head_num, L, L), index b*nh + h.
        return out, attn.reshape(B * head_num, L, L)
    (out,) = results
    return out


def _reference(x, padding_mask, params, head_num, attn_mask=None,
               compute_dtype=jnp.bfloat16):
    """Pure-JAX reference matching the PyTorch forward (eval mode), with the
    same compute-dtype casts the kernel applies around its MXU matmuls."""
    B, L, H = x.shape
    kd = H // head_num
    scale = 1.0 / math.sqrt(kd)
    cd = jnp.dtype(compute_dtype)
    f32 = jnp.float32

    xc = x.astype(cd)
    q = jnp.dot(xc, params["wq"].T.astype(cd),
                preferred_element_type=f32) + params["bq"]
    k = jnp.dot(xc, params["wk"].T.astype(cd),
                preferred_element_type=f32) + params["bk"]
    v = jnp.dot(xc, params["wv"].T.astype(cd),
                preferred_element_type=f32) + params["bv"]
    q = (q * scale).astype(cd)
    k = k.astype(cd)
    v = v.astype(cd)

    def split(t):   # (B, L, H) -> (B*nh, L, kd), batched-head index b*nh + h
        t = t.reshape(B, L, head_num, kd)
        return jnp.transpose(t, (0, 2, 1, 3)).reshape(B * head_num, L, kd)

    qh, kh, vh = split(q), split(k), split(v)
    s = jnp.einsum("bqd,bkd->bqk", qh, kh, preferred_element_type=f32)
    if attn_mask is not None:
        am = jnp.broadcast_to(attn_mask[:, None], (B, head_num, L, L))
        s = jnp.where(am.reshape(B * head_num, L, L), -jnp.inf, s)
    pm = jnp.broadcast_to(padding_mask[:, None, None, :], (B, head_num, L, L))
    s = jnp.where(pm.reshape(B * head_num, L, L), -jnp.inf, s)
    attn = jax.nn.softmax(s, axis=-1)
    res = jnp.einsum("bqk,bkd->bqd", attn.astype(cd), vh,
                     preferred_element_type=f32)
    res = res.reshape(B, head_num, L, kd)
    res = jnp.transpose(res, (0, 2, 1, 3)).reshape(B, L, H)
    res = jnp.dot(res.astype(cd), params["wfc"].T.astype(cd),
                  preferred_element_type=f32) + params["bfc"]
    return res, attn


def _init_params(key, model_dim):
    """Deterministic init: xavier_uniform weights, PyTorch-style bias init."""
    keys = jax.random.split(key, 8)
    xav = math.sqrt(6.0 / (model_dim + model_dim))
    binit = 1.0 / math.sqrt(model_dim)
    u = lambda k, b: jax.random.uniform(k, (model_dim, model_dim),
                                        jnp.float32, -b, b)
    ub = lambda k, b: jax.random.uniform(k, (model_dim,), jnp.float32, -b, b)
    return {
        "wq": u(keys[0], xav), "bq": ub(keys[1], binit),
        "wk": u(keys[2], xav), "bk": ub(keys[3], binit),
        "wv": u(keys[4], xav), "bv": ub(keys[5], binit),
        "wfc": u(keys[6], xav), "bfc": ub(keys[7], binit),
    }


if __name__ == "__main__":
    B, L, H, head_num = 2, 8, 32, 4

    key = jax.random.PRNGKey(0)
    k_x, k_p = jax.random.split(key)
    x = jax.random.normal(k_x, (B, L, H), jnp.float32)
    # padding mask: last 2 key positions of batch 1 are padded
    padding_mask = jnp.zeros((B, L), jnp.bool_).at[1, -2:].set(True)
    params = _init_params(k_p, H)

    # Path 1: padding mask only, attention weights returned (PyTorch default).
    out, attn = multihead_attention(x, padding_mask, params, head_num)
    out = jax.block_until_ready(out)
    attn = jax.block_until_ready(attn)

    ref_out, ref_attn = _reference(x, padding_mask, params, head_num)
    assert out.shape == (B, L, H)
    assert attn.shape == (B * head_num, L, L)
    # bf16 MXU inputs + approximate-reciprocal softmax -> small relative noise.
    assert jnp.allclose(out, ref_out, atol=2e-2, rtol=2e-2), (
        float(jnp.max(jnp.abs(out - ref_out))))
    assert jnp.allclose(attn, ref_attn, atol=2e-2, rtol=2e-2), (
        float(jnp.max(jnp.abs(attn - ref_attn))))

    # Path 2: explicit (causal) attn_mask, weights not needed -> the
    # O(nh*L^2) attention-weight HBM writeback is skipped entirely.
    attn_mask = jnp.broadcast_to(jnp.triu(jnp.ones((L, L), jnp.bool_), k=1),
                                 (B, L, L))
    out2 = multihead_attention(x, padding_mask, params, head_num,
                               attn_mask=attn_mask, need_weights=False)
    out2 = jax.block_until_ready(out2)
    ref_out2, _ = _reference(x, padding_mask, params, head_num,
                             attn_mask=attn_mask)
    assert out2.shape == (B, L, H)
    assert jnp.allclose(out2, ref_out2, atol=2e-2, rtol=2e-2), (
        float(jnp.max(jnp.abs(out2 - ref_out2))))

    print("KERNEL_OK")
</pallas_src>

<mosaic_0001>
module attributes {stable_mosaic.version = 11 : i64} {
  func.func @_mha_kernel(%arg0: i32, %arg1: i32, %arg2: memref<1x8x32xbf16, #tpu.memory_space<vmem>>, %arg3: memref<1x1x8xbf16, #tpu.memory_space<vmem>>, %arg4: memref<4x32x24xbf16, #tpu.memory_space<vmem>>, %arg5: memref<4x1x24xf32, #tpu.memory_space<vmem>>, %arg6: memref<4x8x32xbf16, #tpu.memory_space<vmem>>, %arg7: memref<1x32xf32, #tpu.memory_space<vmem>>, %arg8: memref<1x8x32xf32, #tpu.memory_space<vmem>>, %arg9: memref<1x1x8x8xf32, #tpu.memory_space<vmem>>) attributes {dimension_semantics = [#tpu.dimension_semantics<parallel>, #tpu.dimension_semantics<arbitrary>], iteration_bounds = array<i64: 2, 4>, scalar_prefetch = 0 : i64, scratch_operands = 0 : i64, tpu.core_type = #tpu.core_type<tc>, window_params = [{transform_indices = @transform_0, window_bounds = array<i64: 1, 8, 32>}, {transform_indices = @transform_1, window_bounds = array<i64: 1, 1, 8>}, {pipeline_mode = #tpu.pipeline_mode<synchronous>, transform_indices = @transform_2, window_bounds = array<i64: 4, 32, 24>}, {pipeline_mode = #tpu.pipeline_mode<synchronous>, transform_indices = @transform_3, window_bounds = array<i64: 4, 1, 24>}, {pipeline_mode = #tpu.pipeline_mode<synchronous>, transform_indices = @transform_4, window_bounds = array<i64: 4, 8, 32>}, {pipeline_mode = #tpu.pipeline_mode<synchronous>, transform_indices = @transform_5, window_bounds = array<i64: 1, 32>}, {transform_indices = @transform_6, window_bounds = array<i64: 1, 8, 32>}, {transform_indices = @transform_7, window_bounds = array<i64: 1, 1, 8, 8>}]} {
    %c0 = arith.constant 0 : index
    %c0_0 = arith.constant 0 : index
    %c0_1 = arith.constant 0 : index
    %0 = vector.load %arg2[%c0, %c0_0, %c0_1] : memref<1x8x32xbf16, #tpu.memory_space<vmem>>, vector<1x8x32xbf16>
    %1 = vector.shape_cast %0 : vector<1x8x32xbf16> to vector<8x32xbf16>
    %2 = arith.index_cast %arg1 : i32 to index
    %c0_2 = arith.constant 0 : index
    %c0_3 = arith.constant 0 : index
    %3 = vector.load %arg4[%2, %c0_2, %c0_3] : memref<4x32x24xbf16, #tpu.memory_space<vmem>>, vector<1x32x24xbf16>
    %4 = vector.shape_cast %3 : vector<1x32x24xbf16> to vector<32x24xbf16>
    %cst = arith.constant dense<0.000000e+00> : vector<8x24xf32>
    %5 = tpu.matmul %1, %4, %cst {dimension_numbers = #tpu.dot_dimension_numbers<[1], [0], [0], [1], [0, 0, 1, 1], [], []>} : vector<8x32xbf16>, vector<32x24xbf16>, vector<8x24xf32> -> vector<8x24xf32>
    %6 = arith.index_cast %arg1 : i32 to index
    %c0_4 = arith.constant 0 : index
    %c0_5 = arith.constant 0 : index
    %7 = vector.load %arg5[%6, %c0_4, %c0_5] : memref<4x1x24xf32, #tpu.memory_space<vmem>>, vector<1x1x24xf32>
    %8 = vector.shape_cast %7 : vector<1x1x24xf32> to vector<1x24xf32>
    %9 = vector.broadcast %8 : vector<1x24xf32> to vector<8x24xf32>
    %10 = arith.addf %5, %9 : vector<8x24xf32>
    %11 = vector.extract_strided_slice %10 {offsets = [0, 0], sizes = [8, 8], strides = [1, 1]} : vector<8x24xf32> to vector<8x8xf32>
    %cst_6 = arith.constant 0.353553385 : f32
    %12 = vector.broadcast %cst_6 : f32 to vector<8x8xf32>
    %13 = arith.mulf %11, %12 : vector<8x8xf32>
    %14 = arith.truncf %13 : vector<8x8xf32> to vector<8x8xbf16>
    %15 = vector.extract_strided_slice %10 {offsets = [0, 8], sizes = [8, 8], strides = [1, 1]} : vector<8x24xf32> to vector<8x8xf32>
    %16 = arith.truncf %15 : vector<8x8xf32> to vector<8x8xbf16>
    %17 = vector.extract_strided_slice %10 {offsets = [0, 16], sizes = [8, 8], strides = [1, 1]} : vector<8x24xf32> to vector<8x8xf32>
    %18 = arith.truncf %17 : vector<8x8xf32> to vector<8x8xbf16>
    %cst_7 = arith.constant dense<0.000000e+00> : vector<8x8xf32>
    %19 = tpu.matmul %14, %16, %cst_7 {dimension_numbers = #tpu.dot_dimension_numbers<[1], [1], [0], [0], [0, 0, 1, 0], [], []>} : vector<8x8xbf16>, vector<8x8xbf16>, vector<8x8xf32> -> vector<8x8xf32>
    %c0_8 = arith.constant 0 : index
    %c0_9 = arith.constant 0 : index
    %c0_10 = arith.constant 0 : index
    %20 = vector.load %arg3[%c0_8, %c0_9, %c0_10] : memref<1x1x8xbf16, #tpu.memory_space<vmem>>, vector<1x1x8xbf16>
    %21 = vector.shape_cast %20 : vector<1x1x8xbf16> to vector<1x8xbf16>
    %22 = arith.extf %21 : vector<1x8xbf16> to vector<1x8xf32>
    %23 = vector.broadcast %22 : vector<1x8xf32> to vector<8x8xf32>
    %24 = arith.addf %19, %23 : vector<8x8xf32>
    %cst_11 = arith.constant dense<0xFF800000> : vector<8xf32>
    %25 = vector.multi_reduction <maximumf>, %24, %cst_11 [1] : vector<8x8xf32> to vector<8xf32>
    %26 = vector.shape_cast %25 : vector<8xf32> to vector<8x1xf32>
    %27 = vector.broadcast %26 : vector<8x1xf32> to vector<8x8xf32>
    %28 = arith.subf %24, %27 : vector<8x8xf32>
    %29 = math.exp %28 : vector<8x8xf32>
    %cst_12 = arith.constant dense<0.000000e+00> : vector<8xf32>
    %30 = vector.multi_reduction <add>, %29, %cst_12 [1] : vector<8x8xf32> to vector<8xf32>
    %31 = vector.shape_cast %30 : vector<8xf32> to vector<8x1xf32>
    %32 = tpu.reciprocal %31 {approx = true} : vector<8x1xf32> -> vector<8x1xf32>
    %33 = vector.broadcast %32 : vector<8x1xf32> to vector<8x8xf32>
    %34 = arith.mulf %29, %33 : vector<8x8xf32>
    %c0_13 = arith.constant 0 : index
    %c0_14 = arith.constant 0 : index
    %c0_15 = arith.constant 0 : index
    %c0_16 = arith.constant 0 : index
    %35 = vector.load %arg9[%c0_13, %c0_14, %c0_15, %c0_16] : memref<1x1x8x8xf32, #tpu.memory_space<vmem>>, vector<1x1x8x8xf32>
    %36 = vector.shape_cast %35 : vector<1x1x8x8xf32> to vector<8x8xf32>
    %37 = vector.shape_cast %34 : vector<8x8xf32> to vector<1x1x8x8xf32>
    tpu.vector_store %arg9[%c0_13, %c0_14, %c0_15, %c0_16], %37 {strides = array<i32>} : memref<1x1x8x8xf32, #tpu.memory_space<vmem>>, vector<1x1x8x8xf32>,
    %38 = arith.truncf %34 : vector<8x8xf32> to vector<8x8xbf16>
    %cst_17 = arith.constant dense<0.000000e+00> : vector<8x8xf32>
    %39 = tpu.matmul %38, %18, %cst_17 {dimension_numbers = #tpu.dot_dimension_numbers<[1], [0], [0], [1], [0, 0, 1, 1], [], []>} : vector<8x8xbf16>, vector<8x8xbf16>, vector<8x8xf32> -> vector<8x8xf32>
    %40 = arith.truncf %39 : vector<8x8xf32> to vector<8x8xbf16>
    %41 = arith.index_cast %arg1 : i32 to index
    %c0_18 = arith.constant 0 : index
    %c0_19 = arith.constant 0 : index
    %42 = vector.load %arg6[%41, %c0_18, %c0_19] : memref<4x8x32xbf16, #tpu.memory_space<vmem>>, vector<1x8x32xbf16>
    %43 = vector.shape_cast %42 : vector<1x8x32xbf16> to vector<8x32xbf16>
    %cst_20 = arith.constant dense<0.000000e+00> : vector<8x32xf32>
    %44 = tpu.matmul %40, %43, %cst_20 {dimension_numbers = #tpu.dot_dimension_numbers<[1], [0], [0], [1], [0, 0, 1, 1], [], []>} : vector<8x8xbf16>, vector<8x32xbf16>, vector<8x32xf32> -> vector<8x32xf32>
    %c0_i32 = arith.constant 0 : i32
    %45 = arith.cmpi eq, %arg1, %c0_i32 : i32
    %46 = arith.extui %45 : i1 to i32
    %c0_i32_21 = arith.constant 0 : i32
    %47 = arith.cmpi ne, %46, %c0_i32_21 : i32
    scf.if %47 {
      %c0_24 = arith.constant 0 : index
      %c0_25 = arith.constant 0 : index
      %51 = vector.load %arg7[%c0_24, %c0_25] : memref<1x32xf32, #tpu.memory_space<vmem>>, vector<1x32xf32>
      %52 = vector.shape_cast %51 : vector<1x32xf32> to vector<32xf32>
      %53 = vector.shape_cast %52 : vector<32xf32> to vector<1x32xf32>
      %54 = vector.broadcast %53 : vector<1x32xf32> to vector<8x32xf32>
      %55 = arith.addf %44, %54 : vector<8x32xf32>
      %c0_26 = arith.constant 0 : index
      %c0_27 = arith.constant 0 : index
      %c0_28 = arith.constant 0 : index
      %56 = vector.load %arg8[%c0_26, %c0_27, %c0_28] : memref<1x8x32xf32, #tpu.memory_space<vmem>>, vector<1x8x32xf32>
      %57 = vector.shape_cast %56 : vector<1x8x32xf32> to vector<8x32xf32>
      %58 = vector.shape_cast %55 : vector<8x32xf32> to vector<1x8x32xf32>
      tpu.vector_store %arg8[%c0_26, %c0_27, %c0_28], %58 {strides = array<i32>} : memref<1x8x32xf32, #tpu.memory_space<vmem>>, vector<1x8x32xf32>,
    } else {
    }
    %c0_i32_22 = arith.constant 0 : i32
    %48 = arith.cmpi sgt, %arg1, %c0_i32_22 : i32
    %49 = arith.extui %48 : i1 to i32
    %c0_i32_23 = arith.constant 0 : i32
    %50 = arith.cmpi ne, %49, %c0_i32_23 : i32
    scf.if %50 {
      %c0_24 = arith.constant 0 : index
      %c0_25 = arith.constant 0 : index
      %c0_26 = arith.constant 0 : index
      %51 = vector.load %arg8[%c0_24, %c0_25, %c0_26] : memref<1x8x32xf32, #tpu.memory_space<vmem>>, vector<1x8x32xf32>
      %52 = vector.shape_cast %51 : vector<1x8x32xf32> to vector<8x32xf32>
      %53 = arith.addf %52, %44 : vector<8x32xf32>
      %c0_27 = arith.constant 0 : index
      %c0_28 = arith.constant 0 : index
      %c0_29 = arith.constant 0 : index
      %54 = vector.load %arg8[%c0_27, %c0_28, %c0_29] : memref<1x8x32xf32, #tpu.memory_space<vmem>>, vector<1x8x32xf32>
      %55 = vector.shape_cast %54 : vector<1x8x32xf32> to vector<8x32xf32>
      %56 = vector.shape_cast %53 : vector<8x32xf32> to vector<1x8x32xf32>
      tpu.vector_store %arg8[%c0_27, %c0_28, %c0_29], %56 {strides = array<i32>} : memref<1x8x32xf32, #tpu.memory_space<vmem>>, vector<1x8x32xf32>,
    } else {
    }
    return
  }
  func.func @transform_0(%arg0: i32, %arg1: i32) -> (i32, i32, i32) {
    %c0_i32 = arith.constant 0 : i32
    %c0_i32_0 = arith.constant 0 : i32
    %c0_i32_1 = arith.constant 0 : i32
    return %arg0, %c0_i32, %c0_i32_0 : i32, i32, i32
  }
  func.func @transform_1(%arg0: i32, %arg1: i32) -> (i32, i32, i32) {
    %c0_i32 = arith.constant 0 : i32
    %c0_i32_0 = arith.constant 0 : i32
    %c0_i32_1 = arith.constant 0 : i32
    return %arg0, %c0_i32, %c0_i32_0 : i32, i32, i32
  }
  func.func @transform_2(%arg0: i32, %arg1: i32) -> (i32, i32, i32) {
    %c0_i32 = arith.constant 0 : i32
    %c0_i32_0 = arith.constant 0 : i32
    %c0_i32_1 = arith.constant 0 : i32
    %c0_i32_2 = arith.constant 0 : i32
    return %c0_i32, %c0_i32_0, %c0_i32_1 : i32, i32, i32
  }
  func.func @transform_3(%arg0: i32, %arg1: i32) -> (i32, i32, i32) {
    %c0_i32 = arith.constant 0 : i32
    %c0_i32_0 = arith.constant 0 : i32
    %c0_i32_1 = arith.constant 0 : i32
    %c0_i32_2 = arith.constant 0 : i32
    return %c0_i32, %c0_i32_0, %c0_i32_1 : i32, i32, i32
  }
  func.func @transform_4(%arg0: i32, %arg1: i32) -> (i32, i32, i32) {
    %c0_i32 = arith.constant 0 : i32
    %c0_i32_0 = arith.constant 0 : i32
    %c0_i32_1 = arith.constant 0 : i32
    %c0_i32_2 = arith.constant 0 : i32
    return %c0_i32, %c0_i32_0, %c0_i32_1 : i32, i32, i32
  }
  func.func @transform_5(%arg0: i32, %arg1: i32) -> (i32, i32) {
    %c0_i32 = arith.constant 0 : i32
    %c0_i32_0 = arith.constant 0 : i32
    %c0_i32_1 = arith.constant 0 : i32
    return %c0_i32, %c0_i32_0 : i32, i32
  }
  func.func @transform_6(%arg0: i32, %arg1: i32) -> (i32, i32, i32) {
    %c0_i32 = arith.constant 0 : i32
    %c0_i32_0 = arith.constant 0 : i32
    %c0_i32_1 = arith.constant 0 : i32
    return %arg0, %c0_i32, %c0_i32_0 : i32, i32, i32
  }
  func.func @transform_7(%arg0: i32, %arg1: i32) -> (i32, i32, i32, i32) {
    %c0_i32 = arith.constant 0 : i32
    %c0_i32_0 = arith.constant 0 : i32
    %c0_i32_1 = arith.constant 0 : i32
    return %arg0, %arg1, %c0_i32, %c0_i32_0 : i32, i32, i32, i32
  }
}

</mosaic_0001>

<bundles_post_ra>
// kernel: tpu_custom_call.1
= control target key start
LH: loop header
LB: loop body
LE: loop exit
PB: predicated region body
PF: predicated region fallthrough
CT: control target
= control target key end

     0   :  { %s1351_s0 = inlined_call_operand.vmem [shape: bf16[2,8,32], index: 0, kind: input, shape index: {}]   ;;  %s1352_s1 = inlined_call_operand.vmem [shape: bf16[2,1,8], index: 1, kind: input, shape index: {}]   ;;  %s1353_s2 = inlined_call_operand.vmem [shape: bf16[4,32,24], index: 2, kind: input, shape index: {}]   ;;  %s1354_s3 = inlined_call_operand.vmem [shape: f32[4,1,24], index: 3, kind: input, shape index: {}]   ;;  %s1355_s4 = inlined_call_operand.vmem [shape: bf16[4,8,32], index: 4, kind: input, shape index: {}]   ;;  %s1356_s5 = inlined_call_operand.vmem [shape: f32[1,32], index: 5, kind: input, shape index: {}]   ;;  %s1357_s6 = inlined_call_operand.hbm [shape: f32[2,8,32], index: 6, kind: output, shape index: {0}]   ;;  %s1358_s7 = inlined_call_operand.hbm [shape: f32[2,4,8,8], index: 7, kind: output, shape index: {1}]  }
   0x1   :  { %1367 = sst [smem:[#allocation13_spill]] %s1351_s0 }
   0x2   :  { %1368 = sst [smem:[#allocation14_spill]] %s1352_s1 }
   0x3   :  { %1369 = sst [smem:[#allocation15_spill]] %s1353_s2 }
   0x4   :  { %1370 = sst [smem:[#allocation16_spill]] %s1354_s3 }
   0x5   :  { %1371 = sst [smem:[#allocation17_spill]] %s1355_s4 }
   0x6   :  { %1372 = sst [smem:[#allocation18_spill]] %s1356_s5 }
   0x7   :  { %1373 = sst [smem:[#allocation19_spill]] %s1357_s6 }
   0x8   :  { %13 = vsyncpa [#allocation3], 0 }
   0x9   :  { %15 = vsyncpa [#allocation3 + $0x1], 0 }
   0xa   :  { %16 = vsyncpa [#allocation5], 0 }
   0xb   :  { %18 = vsyncpa [#allocation5 + $0x1], 0  ;;  %s1097_s24 = smov 0   ;;  %s1099_s25 = smov 0  }
   0xc   :  { %s1101_s26 = smov 0   ;;  %s1103_s27 = smov 0  }
   0xd   :  { %s1105_s28 = smov 0   ;;  %s1107_s29 = smov 0  }
   0xe   :  { %s1109_s30 = smov 0   ;;  %s1111_s8 = smov 0  }
   0xf   :  { %s1113_s9 = smov 0   ;;  %s1115_s10 = smov 0  }
  0x10   :  { %s1117_s11 = smov 0  }
  0x11 LB: > { %1374 = sst [smem:[#allocation8_spill]] %s1021_s27  ;;  %s729_s12 = sadd.s32 4294967295, %s1049_s11   ;;  %s1049_s11 = sphi %s1117_s11, %s24_s11   ;;  %s1045_s10 = sphi %s1115_s10, %s1401_s10   ;;  %s1041_s9 = sphi %s1113_s9, %s1408_s9   ;;  %s1037_s8 = sphi %s1111_s8, %s1399_s8   ;;  %s1033_s30 = sphi %s1109_s30, %s1398_s30   ;;  %s1029_s29 = sphi %s1107_s29, %s1407_s29   ;;  %s1025_s28 = sphi %s1105_s28, %s1406_s28   ;;  %s1021_s27 = sphi %s1103_s27, %s1405_s27   ;;  %s1017_s26 = sphi %s1101_s26, %s1404_s26   ;;  %s1013_s25 = sphi %s1099_s25, %s1403_s25   ;;  %s1009_s24 = sphi %s1097_s24, %s1402_s24  }
  0x12   : > { %1375 = sst [smem:[#allocation9_spill]] %s1041_s9  ;;  %s730_s13 = sadd.s32 4294967294, %s1049_s11  }
  0x13   : > { %1376 = sst [smem:[#allocation10_spill]] %s1045_s10  ;;  %s33_s14 = sadd.s32 1, %s1041_s9 }
  0x14   : > { %s36_s15 = sadd.s32 1, %s1045_s10  ;;  %p34_p0 = scmp.ge.s32.totalorder %s33_s14, 4 }
  0x15   : > { %s179_s16 = sadd.s32 1, %s1029_s29  ;;  %p189_p1 = scmp.ne.s32.totalorder %s1029_s29, %s1025_s28 }
  0x16   : > { %p1159_p2 = scmp.eq.s32.totalorder %s729_s12, 7  ;;  %s1410_s14 = smov (%p34_p0, %s33_s14), 0 }
  0x17   : > { %1378 = sst [smem:[#allocation11_spill]] %s1410_s14  ;;  %s1412_s15 = smov (!%p34_p0, %s36_s15), %s1045_s10 }
  0x18   : > { %p1168_p3 = por %p1159_p2, %p189_p1  ;;  %p195_p4 = scmp.ne.s32.totalorder %s1025_s28, %s1021_s27 }
  0x19   : > { %p38_p5 = scmp.ge.s32.totalorder %s1412_s15, 2  ;;  %p1174_p6 = scmp.eq.s32.totalorder %s730_s13, 7 }
  0x1a   : > { %s203_s20 = ssub.s32 %s1041_s9, %s1410_s14  ;;  %s207_s21 = sadd.s32 1, %s1017_s26 }
  0x1b   : > { %s1414_s15 = smov (%p38_p5, %s1412_s15), 0  ;;  %p1185_p7 = por %p1174_p6, %p195_p4 }
  0x1c   : > { %1381 = sst [smem:[#allocation12_spill]] %s1414_s15  ;;  %p217_p8 = scmp.ne.s32.totalorder %s1017_s26, %s1013_s25 }
  0x1d   : > { %s1382_s22 = scalar_select %p1185_p7, 1, 0 }
  0x1e   : > { %s176_s23 = ssub.s32 %s1045_s10, %s1414_s15  ;;  %p223_p9 = scmp.ne.s32.totalorder %s1013_s25, %s1009_s24 }
  0x1f   : > { %p177_p10 = scmp.eq.s32.totalorder %s176_s23, 0  ;;  %s204_s12 = sor.u32 %s203_s20, %s176_s23 }
  0x20   : > { %p205_p11 = scmp.eq.s32.totalorder %s204_s12, 0  ;;  %p1197_p12 = por %p217_p8, %p1159_p2 }
  0x21   : > { %s1202_s14 = scalar_select %p177_p10, %s1029_s29, %s179_s16  }
  0x22   : > { %s1205_s9 = scalar_select %p205_p11, %s1017_s26, %s207_s21  }
  0x23   : > { %p1209_p13 = por %p223_p9, %p1174_p6  ;;  %p733_p0 = scmp.ge.s32.totalorder %s1049_s11, 1 }
  0x24   : > { %p267_p1 = scmp.lt.s32.totalorder %s1049_s11, 9 }
  0x25   : > { %s1384_s27 = scalar_select %p1209_p13, 1, 0 }
  0x26   : > { %p268_p4 = pnand %p733_p0, %p267_p1 }
  0x27   : > { %s1362_s17 = sand.u32 (!%p268_p4), 1, %s1025_s28   ;;  %s757_s20 = sshll.u32 (!%p268_p4), %s1033_s30, 4 }
  0x28   : > { %271 = sbr.rel (%p268_p4) target bundleno = 1344 (0x540), region = 44  ;;  %s1219_s16 = sshll.u32 (!%p268_p4), %s1362_s17, 3 }
  0x29   : > { %s1385_s2 = sld [smem:[#allocation15_spill]] (!%p268_p4)  ;;  %p306_p2 = scmp.lt.s32.totalorder (!%p268_p4), %s1037_s8, 1 }
  0x2a   : > { %s1386_s0 = sld [smem:[#allocation13_spill]] (!%p268_p4)  ;;  %s1053_s15 = smov (!%p268_p4), 120  }
  0x2b   : > { %s1387_s3 = sld [smem:[#allocation16_spill]] (!%p268_p4)  ;;  %p747_p5 = scmp.ne.s32.totalorder (!%p268_p4), %s1033_s30, 0 }
  0x2c   : > { %s1388_s1 = sld [smem:[#allocation14_spill]] (!%p268_p4) }
  0x2d   : > { %v1051_v0 = vmov 0.0   ;;  %vm1052_vm0 = vmmov 0   ;;  %s1228_s12 = scalar_select %p306_p2, %s1037_s8, 1  ;;  %vm342_vm1 = vcmask 261120   ;;  %vm398_vm2 = vcmask 64512  }
  0x2e   : > { %767 = vmatprep.subr.bf16.mxu0 %v1051_v0  ;;  %771 = vmatprep.mubr.msk.bf16.mxu0 %vm1052_vm0, %v1051_v0  ;;  %v391_v15 = vlaneseq  ;;  %s1389_s4 = sld [smem:[#allocation17_spill]]  ;;  %vm463_vm3 = vcmask 1043456  }
  0x2f   : > { %s317_s23 = scalar_lea.vmem %s1385_s2, %s757_s20  ;;  %775 = vmatprep.subr.bf16.mxu1 %v1051_v0  ;;  %777 = vmatprep.mubr.msk.bf16.mxu1 %vm1052_vm0, %v1051_v0  ;;  %s736_s17 = sshll.u32 %s1228_s12, 2 }
  0x30   : > { %v897_v1 = vld [vmem:[%s317_s23 + $0x8] sm:$0xff]   ;;  %v898_v2 = vld [vmem:[%s317_s23] sm:$0xff]   ;;  %s309_s20 = scalar_lea.vmem %s1386_s0, %s736_s17  ;;  %v392_v16 = vshrl.u32 %v391_v15, 7  ;;  %s1364_s2 = sand.u32 1, %s1013_s25  }
  0x31   : > { %768 = vmatpush3.bf16.msra.mxu0 %v897_v1  ;;  %v314_v3 = vld [vmem:[%s309_s20] sm:$0xf]  ;;  %s322_s23 = scalar_lea.vmem %s1387_s3, %s1033_s30  ;;  %s1256_s17 = sshll.u32 %s1364_s2, 3 }
  0x32   : > { %769 = vmatprep.subr.bf16.mxu0 %v1051_v0  ;;  %v739_v4 = vld [vmem:[%s322_s23] ss:$0 sm:$0xff]  ;;  %s312_s19 = scalar_lea.vmem %s1388_s1, %s1228_s12  ;;  %v393_v19 = vsub.s32 0, %v392_v16  ;;  %s745_s12 = sshll.u32 %s1033_s30, 2 }
  0x33   : > { %v389_v17 = vld [vmem:[%s312_s19] sm:$0x1]  ;;  %s1365_s19 = scalar_lea.vmem [#allocation4], %s1256_s17  ;;  %s1390_s5 = sld [smem:[#allocation18_spill]] (!%p747_p5) }
  0x34   : > { %v390_v18 = vunpack.c.l.bf16 %v389_v17  ;;  %s509_s23 = scalar_lea.vmem %s1389_s4, %s745_s12  ;;  %s298_s12 = scalar_lea.vmem [#allocation2], %s1219_s16 }
  0x35   : > { %770 = vmatpush3.bf16.msra.mxu0 %v898_v2  ;;  %v510_v32 = vld [vmem:[%s509_s23] sm:$0xf] }
  0x36   : > { %781 = vmatprep.subr.bf16.mxu0 %v1051_v0  ;;  %v394_v20 = vrot.slane %v390_v18, %v393_v19  ;;  %v515_v33 = vsel %vm463_vm3, %v510_v32, 0 }
  0x38   : > { %772 = vmatmul.mubr.msk.bf16.vlgmr.msra.gmra.mxu0 %vm342_vm1, %v314_v3 }
  0x39   : > { %783 = vmatprep.mubr.msk.bf16.mxu0 %vm1052_vm0, %v1051_v0 }
  0xf8   : > { %v380_v5 = vpop.f32.mrf.mxu0 }
  0xf9   : > { %v381_v6 = vadd.f32 %v739_v4, %v380_v5 }
  0xfa   : > { %v773_v7 = vpop.f32.mrf.mxu0 }
  0xfb   : > { %v388_v8 = vpack.c.bf16 %v381_v6, %v381_v6  ;;  %v386_v13 = vmul.f32 0.35355338, %v381_v6 }
  0xfc   : > { %v383_v9 = vpop.f32.mrf.mxu0 }
  0xfd   : > { %396 = vrot.lane.b32.xlu0 %v388_v8, %s1053_s15  ;;  %v387_v14 = vpack.c.bf16 %v386_v13, %v386_v13  ;;  %s1054_s15 = smov 112  }
  0xfe   : > { %v774_v10 = vpop.f32.mrf.mxu0 }
 0x16f   : > { %v397_v11 = vpop.permute.xlu0 %396 }
 0x170   : > { %v403_v12 = vsel %vm398_vm2, %v397_v11, 0 }
 0x171   : > { %776 = vmatpush3.bf16.xpose.msra.mxu1 %v403_v12 }
 0x172   : > { %787 = vmatprep.subr.bf16.mxu1 %v1051_v0 }
 0x178   : > { %778 = vmatmul.mubr.msk.bf16.vlgmr.msra.gmra.mxu1 %vm398_vm2, %v387_v14 }
 0x179   : > { %789 = vmatprep.mubr.msk.bf16.mxu1 %vm1052_vm0, %v1051_v0  ;;  %788 = vmatpush3.bf16.msra.mxu1 %v515_v33 }
 0x238   : > { %v439_v21 = vpop.f32.mrf.mxu1 }
 0x239   : > { %v440_v22 = vadd.f32 %v439_v21, %v394_v20 }
 0x23a   : > { %v779_v23 = vpop.f32.mrf.mxu1 }
 0x23b   : > { %v445_v24 = vsel %vm398_vm2, %v440_v22, -inf }
 0x23c   : > { %446 = vmax.xlane.f32.xlu0 %v445_v24  ;;  %v442_v25 = vpop.f32.mrf.mxu1 }
 0x23e   : > { %v780_v26 = vpop.f32.mrf.mxu1 }
 0x2c5   : > { %v447_v27 = vpop.xlane.xlu0 %446 }
 0x2c6   : > { %v448_v28 = vsub.f32 %v440_v22, %v447_v27 }
 0x2c8   : > { %v449_v29 = vmul.f32 1.442695, %v448_v28 }
 0x2ca   : > { %899 = vpow2.f32 %v449_v29 }
 0x2d7   : > { %v900_v30 = vpop.eup %899 }
 0x2d8   : > { %v451_v31 = vsel %vm398_vm2, %v900_v30, 0.0 }
 0x2d9   : > { %452 = vadd.xlane.f32.xlu1 %v451_v31 }
 0x2ea   : > { %458 = vrot.lane.b32.xlu1 %v388_v8, %s1054_s15 }
 0x362   : > { %v453_v34 = vpop.xlane.xlu1 %452 }
 0x363   : > { %901 = vrcp.f32 %v453_v34 }
 0x366   : > { %v459_v35 = vpop.permute.xlu1 %458 }
 0x367   : > { %v465_v36 = vsel %vm463_vm3, %v459_v35, 0 }
 0x368   : > { %782 = vmatpush3.bf16.msra.mxu0 %v465_v36 }
 0x370   : > { %v902_v37 = vpop.eup %901 }
 0x371   : > { %v455_v38 = vmul.f32 %v902_v37, %v900_v30 }
 0x373   : > { %456 = vst.msk [vmem:[%s1365_s19] sm:$0xff] %vm398_vm2, %v455_v38  ;;  %v457_v39 = vpack.c.bf16 %v455_v38, %v455_v38 }
 0x375   : > { %784 = vmatmul.mubr.msk.bf16.vlgmr.msra.gmra.mxu0 %vm398_vm2, %v457_v39 }
 0x435   : > { %v501_v40 = vpop.f32.mrf.mxu0 }
 0x436   : > { %v507_v41 = vpack.c.bf16 %v501_v40, %v501_v40 }
 0x437   : > { %v785_v42 = vpop.f32.mrf.mxu0 }
 0x438   : > { %790 = vmatmul.mubr.msk.bf16.vlgmr.msra.gmra.mxu1 %vm398_vm2, %v507_v41 }
 0x439   : > { %v504_v43 = vpop.f32.mrf.mxu0 }
 0x43b   : > { %v786_v44 = vpop.f32.mrf.mxu0 }
 0x4f8   : > { %v551_v45 = vpop.f32.mrf.mxu1 }
 0x4fa   : > { %v791_v46 = vpop.f32.mrf.mxu1  ;;  %560 = sbr.rel (%p747_p5) target bundleno = 1283 (0x503), region = 48 }
 0x4fc   : > { %v554_v47 = vpop.f32.mrf.mxu1 }
 0x4fe   : > { %v792_v48 = vpop.f32.mrf.mxu1 }
 0x4ff   : > { %v748_v49 = vld [vmem:[%s1390_s5] ss:$0 sm:$0xff] }
 0x500   : > { %v568_v50 = vadd.f32 %v748_v49, %v551_v45 }
 0x502   : > { %569 = vst.msk [vmem:[%s298_s12] sm:$0xff] %vm342_vm1, %v568_v50 }
 0x503 PF: > { %p749_p6 = scmp.le.s32.totalorder %s1033_s30, 0 }
 0x505   : > { %573 = sbr.rel (%p749_p6) target bundleno = 1294 (0x50e), region = 52 }
 0x50a   : > { %v574_v51 = vld [vmem:[%s298_s12] sm:$0xff] }
 0x50b   : > { %v575_v52 = vadd.f32 %v574_v51, %v551_v45 }
 0x50d   : > { %576 = vst.msk [vmem:[%s298_s12] sm:$0xff] %vm342_vm1, %v575_v52 }
 0x50e PF: > { %s752_s16 = sshll.u32 %s1037_s8, 7  ;;  %s1391_s6 = sld [smem:[#allocation19_spill]] }
 0x50f   : > { %s596_s21 = sshll.u32 %s298_s12, 4  ;;  %s1392_s2 = sand.u32 1, %s1025_s28   ;;  %s597_s21 = int_to_ptr.vmem [resolvable:$true] %s596_s21 }
 0x510   : > { %s578_s19 = scalar_lea.sflag [#allocation3], %s1392_s2  ;;  %s903_s0 = scalar_lea.vmem %s597_s21, 128 }
 0x511   : > { %p904_p8 = scmp.ne.s32.totalorder %s597_s21, %s903_s0  ;;  %s1055_s1 = smov [#allocation2]  }
 0x512   : > { %s907_s3 = sshll.u32 %s1055_s1, 4  ;;  %s908_s3 = int_to_ptr.vmem [resolvable:$false] %s907_s3 }
 0x513   : > { %p905_p9 = pnand %p904_p8, %p1168_p3  ;;  %s909_s4 = scalar_lea.vmem %s908_s3, 256 }
 0x514   : > { %s594_s20 = scalar_lea.hbm %s1391_s6, %s752_s16  ;;  %p910_p11 = scmp.lt.s32.totalorder %s597_s21, %s908_s3 }
 0x515   : > { %p906_p10 = pneg %p905_p9  ;;  %p911_p0 = scmp.lt.s32.totalorder %s909_s4, %s903_s0 }
 0x517   : > { %p912_p1 = por %p911_p0, %p910_p11 }
 0x519   : > { %p913_p4 = pnand %p912_p1, %p906_p10 }
 0x51b   : > { %916 = shalt.err (!%p913_p4)
}
 0x51c   : > { %s917_s23 = scalar_lea.hbm %s594_s20, 128  ;;  %s921_s16 = scalar_lea.hbm %s1391_s6, 256 }
 0x51d   : > { %p918_p2 = scmp.ne.s32.totalorder %s594_s20, %s917_s23  ;;  %p922_p8 = scmp.lt.s32.totalorder %s594_s20, %s1391_s6 }
 0x51e   : > { %p923_p9 = scmp.lt.s32.totalorder %s921_s16, %s917_s23 }
 0x51f   : > { %p919_p5 = pnand %p918_p2, %p1168_p3 }
 0x520   : > { %p924_p13 = por %p923_p9, %p922_p8 }
 0x521   : > { %p920_p6 = pneg %p919_p5 }
 0x523   : > { %p925_p7 = pnand %p924_p13, %p920_p6 }
 0x525   : > { %928 = shalt.err (!%p925_p7)
}
 0x526   : > { %793 = dma.vmem_to_hbm [thread:$0]  (%p1168_p3), %s597_s21, 128, %s594_s20, %s578_s19  }
 0x527   : > { %s753_s0 = sshll.u32 %s1037_s8, 2  ;;  %s1393_s1 = scalar_lea.vmem [#allocation4], %s1256_s17 }
 0x528   : > { %s611_s3 = sshll.u32 %s1393_s1, 4  ;;  %s607_s4 = sadd.s32 %s1033_s30, %s753_s0  ;;  %s612_s3 = int_to_ptr.vmem [resolvable:$true] %s611_s3 }
 0x529   : > { %s754_s2 = sshll.u32 %s607_s4, 7  ;;  %s1394_s16 = sand.u32 1, %s1013_s25  }
 0x52a   : > { %s609_s23 = scalar_lea.hbm %s1358_s7, %s754_s2  ;;  %s583_s15 = scalar_lea.sflag [#allocation5], %s1394_s16 }
 0x52b   : > { %s929_s6 = scalar_lea.vmem %s612_s3, 128  ;;  %s1056_s18 = smov [#allocation4]  }
 0x52c   : > { %p930_p7 = scmp.ne.s32.totalorder %s612_s3, %s929_s6  ;;  %s933_s10 = sshll.u32 %s1056_s18, 4  ;;  %s934_s10 = int_to_ptr.vmem [resolvable:$false] %s933_s10 }
 0x52d   : > { %s935_s8 = scalar_lea.vmem %s934_s10, 256  ;;  %p936_p3 = scmp.lt.s32.totalorder %s612_s3, %s934_s10 }
 0x52e   : > { %p931_p13 = pnand %p930_p7, %p1197_p12  ;;  %p937_p11 = scmp.lt.s32.totalorder %s935_s8, %s929_s6 }
 0x530   : > { %p932_p10 = pneg %p931_p13  ;;  %p938_p0 = por %p937_p11, %p936_p3 }
 0x532   : > { %p939_p1 = pnand %p938_p0, %p932_p10 }
 0x534   : > { %942 = shalt.err (!%p939_p1)
}
 0x535   : > { %s943_s30 = scalar_lea.hbm %s609_s23, 128  ;;  %s947_s20 = scalar_lea.hbm %s1358_s7, 1024 }
 0x536   : > { %p944_p4 = scmp.ne.s32.totalorder %s609_s23, %s943_s30  ;;  %p948_p6 = scmp.lt.s32.totalorder %s609_s23, %s1358_s7 }
 0x537   : > { %p949_p8 = scmp.lt.s32.totalorder %s947_s20, %s943_s30 }
 0x538   : > { %p945_p2 = pnand %p944_p4, %p1197_p12 }
 0x539   : > { %p950_p9 = por %p949_p8, %p948_p6 }
 0x53a   : > { %p946_p5 = pneg %p945_p2 }
 0x53c   : > { %p951_p7 = pnand %p950_p9, %p946_p5 }
 0x53e   : > { %954 = shalt.err (!%p951_p7)
}
 0x53f   : > { %794 = dma.vmem_to_hbm [thread:$0]  (%p1197_p12), %s612_s3, 128, %s609_s23, %s583_s15  }
 0x540 PF: > { %s1395_s6 = sld [smem:[#allocation8_spill]]  ;;  %p804_p13 = scmp.ge.s32.totalorder %s1049_s11, 2 }
 0x541   : > { %p1396_p10 = scmp.ne.s32.totalorder %s1382_s22, 0 }
 0x543   : > { %p798_p3 = pnand %p804_p13, %p1396_p10 }
 0x545   : > { %p799_p11 = pneg %p798_p3 }
 0x546   : > { %s623_s10 = sand.u32 1, %s1395_s6  }
 0x547   : > { %s624_s1 = scalar_lea.sflag [#allocation3], %s623_s10 }
 0x548   : > { %1000 = dma.done.wait (%p799_p11), %s624_s1, 128  }
 0x549   : > { %1002 = vsyncadd (%p799_p11), %s624_s1, 4294967168  ;;  %s632_s4 = sand.u32 1, %s1009_s24   ;;  %p1397_p0 = scmp.ne.s32.totalorder %s1384_s27, 0 }
 0x54a   : > { %s633_s13 = scalar_lea.sflag [#allocation5], %s632_s4 }
 0x54b   : > { %p801_p1 = pnand %p804_p13, %p1397_p0 }
 0x54d   : > { %p802_p4 = pneg %p801_p1 }
 0x54f   : > { %1004 = dma.done.wait (%p802_p4), %s633_s13, 128  }
 0x550   : > { %1006 = vsyncadd (%p802_p4), %s633_s13, 4294967168  ;;  %s24_s11 = sadd.s32 1, %s1049_s11   ;;  %s1398_s30 = sld [smem:[#allocation9_spill]] }
 0x551   : > { %p21_p12 = scmp.ge.s32.totalorder %s24_s11, 10   ;;  %s1399_s8 = sld [smem:[#allocation10_spill]] }
 0x552   : > { %s1400_s22 = sld [smem:[#allocation11_spill]]  ;;  %s1402_s24 = smov %s1013_s25 }
 0x553   : > { %s1401_s10 = sld [smem:[#allocation12_spill]]  ;;  %s1403_s25 = smov %s1017_s26 }
 0x554   : > { %s1404_s26 = smov %s1205_s9  ;;  %s1405_s27 = smov %s1025_s28 }
 0x555   : > { %s1406_s28 = smov %s1029_s29  ;;  %s1407_s29 = smov %s1202_s14 }
 0x556   :  { %23 = sbr.rel (!%p21_p12) target bundleno = 17 (0x11), region = 110 }
 0x558   : > { %s1408_s9 = smov %s1400_s22 }
 0x55b   :  { %638 = vsyncpa [#allocation3], 1 }
 0x55c   :  { %640 = vsyncpa [#allocation3 + $0x1], 1 }
 0x55d   :  { %641 = vsyncpa [#allocation5], 1 }
 0x55e   :  { %643 = vsyncpa [#allocation5 + $0x1], 1 }

</bundles_post_ra>
